<compile_context>
chip_gen: v7x
topology: tpu7x:2x2x1
jax: 0.10.0
libtpu: 0.0.40
codegen_flags: <defaults>
</compile_context>

<pallas_src>
import jax
import jax.numpy as jnp
from jax.experimental import pallas as pl
from jax.experimental.pallas import tpu as pltpu


def agent_brain_kernel(x_ref, w1_ref, b1_ref, w2_ref, b2_ref, o_ref):
    # fc1: (TB,10) @ (10,16) + (1,16) -> ReLU   (all in VMEM / f32 accumulate)
    h = jnp.dot(x_ref[...], w1_ref[...], preferred_element_type=jnp.float32)
    h = jnp.maximum(h + b1_ref[...], 0.0)
    # fc2: (TB,16) @ (16,4) + (1,4)
    y = jnp.dot(h, w2_ref[...], preferred_element_type=jnp.float32)
    y = y + b2_ref[...]
    o_ref[...] = y.astype(o_ref.dtype)


def agent_brain_forward(x, w1, b1, w2, b2, *, tile_b=32768):
    """x: (B, 10) f32; w1: (10, 16); b1: (16,); w2: (16, 4); b2: (4,) -> (B, 4).

    tile_b: rows per grid step (multiple of 8). Large tiles (~16K-64K rows)
    amortize the per-step overhead against ~56 B/row of HBM traffic.
    """
    B, K = x.shape
    N1 = w1.shape[1]
    N2 = w2.shape[1]
    b1_2d = b1.reshape(1, N1)
    b2_2d = b2.reshape(1, N2)

    assert tile_b % 8 == 0, "tile_b must be a multiple of 8 (f32 sublane)"
    if B <= tile_b:
        # Single tile: block shape equals the full array dims, which satisfies
        # the (8,128)/full-dim rule for any B, including tiny batches.
        tb = B
    else:
        tb = tile_b
    grid = (pl.cdiv(B, tb),)

    flops = 2 * B * (K * N1 + N1 * N2)
    bytes_accessed = B * (K + N2) * 4 + (K * N1 + N1 + N1 * N2 + N2) * 4

    return pl.pallas_call(
        agent_brain_kernel,
        out_shape=jax.ShapeDtypeStruct((B, N2), jnp.float32),
        grid=grid,
        in_specs=[
            # x: tiled along batch, pipelined / double-buffered by Pallas.
            pl.BlockSpec((tb, K), lambda i: (i, 0)),
            # weights/biases: constant index_map -> DMA'd once, stay resident.
            pl.BlockSpec((K, N1), lambda i: (0, 0)),
            pl.BlockSpec((1, N1), lambda i: (0, 0)),
            pl.BlockSpec((N1, N2), lambda i: (0, 0)),
            pl.BlockSpec((1, N2), lambda i: (0, 0)),
        ],
        out_specs=pl.BlockSpec((tb, N2), lambda i: (i, 0)),
        compiler_params=pltpu.CompilerParams(
            dimension_semantics=("parallel",),
        ),
        cost_estimate=pl.CostEstimate(
            flops=flops, bytes_accessed=bytes_accessed, transcendentals=0
        ),
    )(x, w1, b1_2d, w2, b2_2d)


def init_params(key):
    """Deterministic synthetic params matching nn.Linear(10,16) and nn.Linear(16,4).
    (PyTorch stores weight as (out,in); we keep the transposed (in,out) layout.)"""
    k1, k2, k3, k4 = jax.random.split(key, 4)
    bound1 = 1.0 / jnp.sqrt(10.0)
    bound2 = 1.0 / jnp.sqrt(16.0)
    w1 = jax.random.uniform(k1, (10, 16), jnp.float32, -bound1, bound1)
    b1 = jax.random.uniform(k2, (16,), jnp.float32, -bound1, bound1)
    w2 = jax.random.uniform(k3, (16, 4), jnp.float32, -bound2, bound2)
    b2 = jax.random.uniform(k4, (4,), jnp.float32, -bound2, bound2)
    return w1, b1, w2, b2


def _reference(x, w1, b1, w2, b2):
    return jnp.maximum(x @ w1 + b1, 0.0) @ w2 + b2


if __name__ == "__main__":
    key = jax.random.PRNGKey(0)
    kx, kp, kx2 = jax.random.split(key, 3)
    w1, b1, w2, b2 = init_params(kp)

    # Small-batch case (module's typical usage): single full-array tile.
    B = 2
    x = jax.random.normal(kx, (B, 10), dtype=jnp.float32)
    out = jax.block_until_ready(agent_brain_forward(x, w1, b1, w2, b2))
    ref = _reference(x, w1, b1, w2, b2)
    assert out.shape == (B, 4)
    assert jnp.allclose(out, ref, atol=1e-5, rtol=1e-5)

    # Multi-tile + ragged-tail case: exercises the pipelined batch grid
    # (grid = cdiv(100, 32) = 4 steps, last tile partial/masked on writeback).
    B2 = 100
    x2 = jax.random.normal(kx2, (B2, 10), dtype=jnp.float32)
    out2 = jax.block_until_ready(
        agent_brain_forward(x2, w1, b1, w2, b2, tile_b=32)
    )
    ref2 = _reference(x2, w1, b1, w2, b2)
    assert out2.shape == (B2, 4)
    assert jnp.allclose(out2, ref2, atol=1e-5, rtol=1e-5)

    print("KERNEL_OK")
</pallas_src>

<mosaic_0001>
module attributes {stable_mosaic.version = 11 : i64} {
  func.func @agent_brain_kernel(%arg0: i32, %arg1: memref<2x10xf32, #tpu.memory_space<vmem>>, %arg2: memref<10x16xf32, #tpu.memory_space<vmem>>, %arg3: memref<1x16xf32, #tpu.memory_space<vmem>>, %arg4: memref<16x4xf32, #tpu.memory_space<vmem>>, %arg5: memref<1x4xf32, #tpu.memory_space<vmem>>, %arg6: memref<2x4xf32, #tpu.memory_space<vmem>>) attributes {dimension_semantics = [#tpu.dimension_semantics<parallel>], iteration_bounds = array<i64: 1>, scalar_prefetch = 0 : i64, scratch_operands = 0 : i64, tpu.core_type = #tpu.core_type<tc>, window_params = [{transform_indices = @transform_0, window_bounds = array<i64: 2, 10>}, {pipeline_mode = #tpu.pipeline_mode<synchronous>, transform_indices = @transform_1, window_bounds = array<i64: 10, 16>}, {pipeline_mode = #tpu.pipeline_mode<synchronous>, transform_indices = @transform_2, window_bounds = array<i64: 1, 16>}, {pipeline_mode = #tpu.pipeline_mode<synchronous>, transform_indices = @transform_3, window_bounds = array<i64: 16, 4>}, {pipeline_mode = #tpu.pipeline_mode<synchronous>, transform_indices = @transform_4, window_bounds = array<i64: 1, 4>}, {transform_indices = @transform_5, window_bounds = array<i64: 2, 4>}]} {
    %c0 = arith.constant 0 : index
    %c0_0 = arith.constant 0 : index
    %0 = vector.load %arg1[%c0, %c0_0] : memref<2x10xf32, #tpu.memory_space<vmem>>, vector<2x10xf32>
    %c0_1 = arith.constant 0 : index
    %c0_2 = arith.constant 0 : index
    %1 = vector.load %arg2[%c0_1, %c0_2] : memref<10x16xf32, #tpu.memory_space<vmem>>, vector<10x16xf32>
    %cst = arith.constant dense<0.000000e+00> : vector<2x16xf32>
    %2 = tpu.matmul %0, %1, %cst {dimension_numbers = #tpu.dot_dimension_numbers<[1], [0], [0], [1], [0, 0, 1, 1], [], []>} : vector<2x10xf32>, vector<10x16xf32>, vector<2x16xf32> -> vector<2x16xf32>
    %c0_3 = arith.constant 0 : index
    %c0_4 = arith.constant 0 : index
    %3 = vector.load %arg3[%c0_3, %c0_4] : memref<1x16xf32, #tpu.memory_space<vmem>>, vector<1x16xf32>
    %4 = vector.broadcast %3 : vector<1x16xf32> to vector<2x16xf32>
    %5 = arith.addf %2, %4 : vector<2x16xf32>
    %cst_5 = arith.constant 0.000000e+00 : f32
    %6 = vector.broadcast %cst_5 : f32 to vector<2x16xf32>
    %7 = arith.maximumf %5, %6 : vector<2x16xf32>
    %c0_6 = arith.constant 0 : index
    %c0_7 = arith.constant 0 : index
    %8 = vector.load %arg4[%c0_6, %c0_7] : memref<16x4xf32, #tpu.memory_space<vmem>>, vector<16x4xf32>
    %cst_8 = arith.constant dense<0.000000e+00> : vector<2x4xf32>
    %9 = tpu.matmul %7, %8, %cst_8 {dimension_numbers = #tpu.dot_dimension_numbers<[1], [0], [0], [1], [0, 0, 1, 1], [], []>} : vector<2x16xf32>, vector<16x4xf32>, vector<2x4xf32> -> vector<2x4xf32>
    %c0_9 = arith.constant 0 : index
    %c0_10 = arith.constant 0 : index
    %10 = vector.load %arg5[%c0_9, %c0_10] : memref<1x4xf32, #tpu.memory_space<vmem>>, vector<1x4xf32>
    %11 = vector.broadcast %10 : vector<1x4xf32> to vector<2x4xf32>
    %12 = arith.addf %9, %11 : vector<2x4xf32>
    %c0_11 = arith.constant 0 : index
    %c0_12 = arith.constant 0 : index
    %13 = vector.load %arg6[%c0_11, %c0_12] : memref<2x4xf32, #tpu.memory_space<vmem>>, vector<2x4xf32>
    tpu.vector_store %arg6[%c0_11, %c0_12], %12 {strides = array<i32>} : memref<2x4xf32, #tpu.memory_space<vmem>>, vector<2x4xf32>,
    return
  }
  func.func @transform_0(%arg0: i32) -> (i32, i32) {
    %c0_i32 = arith.constant 0 : i32
    %c0_i32_0 = arith.constant 0 : i32
    return %arg0, %c0_i32 : i32, i32
  }
  func.func @transform_1(%arg0: i32) -> (i32, i32) {
    %c0_i32 = arith.constant 0 : i32
    %c0_i32_0 = arith.constant 0 : i32
    %c0_i32_1 = arith.constant 0 : i32
    return %c0_i32, %c0_i32_0 : i32, i32
  }
  func.func @transform_2(%arg0: i32) -> (i32, i32) {
    %c0_i32 = arith.constant 0 : i32
    %c0_i32_0 = arith.constant 0 : i32
    %c0_i32_1 = arith.constant 0 : i32
    return %c0_i32, %c0_i32_0 : i32, i32
  }
  func.func @transform_3(%arg0: i32) -> (i32, i32) {
    %c0_i32 = arith.constant 0 : i32
    %c0_i32_0 = arith.constant 0 : i32
    %c0_i32_1 = arith.constant 0 : i32
    return %c0_i32, %c0_i32_0 : i32, i32
  }
  func.func @transform_4(%arg0: i32) -> (i32, i32) {
    %c0_i32 = arith.constant 0 : i32
    %c0_i32_0 = arith.constant 0 : i32
    %c0_i32_1 = arith.constant 0 : i32
    return %c0_i32, %c0_i32_0 : i32, i32
  }
  func.func @transform_5(%arg0: i32) -> (i32, i32) {
    %c0_i32 = arith.constant 0 : i32
    %c0_i32_0 = arith.constant 0 : i32
    return %arg0, %c0_i32 : i32, i32
  }
}

</mosaic_0001>

<bundles_post_ra>
// kernel: tpu_custom_call.1
= control target key start
LH: loop header
LB: loop body
LE: loop exit
PB: predicated region body
PF: predicated region fallthrough
CT: control target
= control target key end

     0   :  { %vm35_vm0 = vcmask 1041408   ;;  %v270_v2 = vmov 0.0|0.0   ;;  %vm271_vm1 = vmmov 1   ;;  %vm272_vm3 = vmmov 0   ;;  %s338_s0 = inlined_call_operand.vmem [shape: f32[2,10], index: 0, kind: input, shape index: {}]   ;;  %s339_s1 = inlined_call_operand.vmem [shape: f32[10,16], index: 1, kind: input, shape index: {}]   ;;  %s340_s2 = inlined_call_operand.vmem [shape: f32[1,16], index: 2, kind: input, shape index: {}]   ;;  %s341_s3 = inlined_call_operand.vmem [shape: f32[16,4], index: 3, kind: input, shape index: {}]   ;;  %s342_s4 = inlined_call_operand.vmem [shape: f32[1,4], index: 4, kind: input, shape index: {}]   ;;  %s343_s5 = inlined_call_operand.hbm [shape: f32[2,4], index: 5, kind: output, shape index: {}]  }
   0x1   :  { %v22_v0 = vld [vmem:[%s339_s1] sm:$0xff]  ;;  %v23_v1 = vld [vmem:[%s339_s1 + $0x8] sm:$0x3]  ;;  %234 = vmatprep.subr.bf16.mxu0 %v270_v2  ;;  %vm236_vm2 = vmpackc.low %vm35_vm0, %vm271_vm1  ;;  %238 = vmatprep.subr.bf16.mxu1 %v270_v2  ;;  %v273_v4 = vmov 0.0  }
   0x2   :  { %v235_v3 = vpack.c.bf16 %v23_v1, %v22_v0  ;;  %224 = vmatprep.mubr.msk.f32.mxu0 %vm272_vm3, %v273_v4  ;;  %231 = vmatprep.mubr.msk.f32.mxu1 %vm272_vm3, %v273_v4 }
   0x3   :  { %10 = vsyncpa [#allocation3], 0  ;;  %v21_v5 = vld [vmem:[%s338_s0] sm:$0x3]  ;;  %vm31_vm4 = vcmask 80896   ;;  %v111_v7 = vld [vmem:[%s341_s3 + $0x8] sm:$0xff] }
   0x4   :  { %237 = vmatpush3.bf16.msk.msra.mxu0 %vm236_vm2, %v235_v3  ;;  %v110_v6 = vld [vmem:[%s341_s3] sm:$0xff]  ;;  %vm119_vm5 = vcmask 130048   ;;  %s274_s30 = smov [#allocation2]   ;;  %vm193_vm6 = vcmask 25600  }
   0x5   :  { %v239_v8 = vpack.c.bf16 %v111_v7, %v110_v6  ;;  %v209_v9 = vld [vmem:[%s340_s2] ss:$0 sm:$0xff]  ;;  %s201_s6 = sshll.u32 %s274_s30, 4  ;;  %s202_s6 = int_to_ptr.vmem [resolvable:$true] %s201_s6 }
   0x6   :  { %v212_v14 = vld [vmem:[%s342_s4] ss:$0 sm:$0xff]  ;;  %s246_s3 = scalar_lea.vmem %s202_s6, 32  ;;  %p251_p1 = scmp.lt.s32.totalorder %s202_s6, %s202_s6 }
   0x7   :  { %225 = vmatmul.mubr.msk.f32.vlgmr.msra.gmra.mrb[0].mxu0 %vm31_vm4, %v21_v5  ;;  %240 = vmatpush3.bf16.msra.mxu1 %v239_v8  ;;  %p247_p0 = scmp.ne.s32.totalorder %s202_s6, %s246_s3  ;;  %p252_p2 = scmp.lt.s32.totalorder %s246_s3, %s246_s3 }
   0x9   :  { %p253_p3 = por %p252_p2, %p251_p1 }
   0xb   :  { %p254_p4 = pnand %p253_p3, %p247_p0 }
  0xda   :  { %v105_v10 = vpop.f32.mrb[0].mxu0 }
  0xdb   :  { %v106_v11 = vadd.f32 %v209_v9, %v105_v10  ;;  %v226_v12 = vpop.f32.mrb[1].mxu0 }
  0xdd   :  { %v109_v13 = vmax.f32 %v106_v11, 0.0 }
  0xdf   :  { %232 = vmatmul.mubr.msk.f32.vlgmr.msra.gmra.mrb[0].mxu1 %vm119_vm5, %v109_v13 }
 0x1b2   :  { %v189_v15 = vpop.f32.mrb[0].mxu1 }
 0x1b3   :  { %v190_v16 = vadd.f32 %v212_v14, %v189_v15  ;;  %v233_v17 = vpop.f32.mrb[1].mxu1 }
 0x1b5   :  { %194 = vst.msk [vmem:[#allocation2] sm:$0x3] %vm193_vm6, %v190_v16 }
 0x1b6   :  { %257 = shalt.err (!%p254_p4)
}
 0x1b7   :  { %s258_s8 = scalar_lea.hbm %s343_s5, 32 }
 0x1b8   :  { %p259_p5 = scmp.ne.s32.totalorder %s343_s5, %s258_s8  ;;  %p262_p6 = scmp.lt.u32.totalorder %s258_s8, %s343_s5 }
 0x1ba   :  { %p264_p7 = pnand %p262_p6, %p259_p5 }
 0x1bc   :  { %267 = shalt.err (!%p264_p7)
}
 0x1bd   :  { %204 = dma.vmem_to_hbm [thread:$0]  %s202_s6, 32, %s343_s5, [#allocation3]  }
 0x1be   :  { %268 = dma.done.wait [#allocation3], 32  }
 0x1bf   :  { %269 = vsyncadd [#allocation3], 4294967264 }
 0x1c0   :  { %208 = vsyncpa [#allocation3], 1 }

</bundles_post_ra>
